<compile_context>
chip_gen: v6e
topology: v6e:2x2x1
jax: 0.10.0
libtpu: 0.0.40
codegen_flags: <defaults>
</compile_context>

<pallas_src>
import jax
import jax.numpy as jnp
from jax.experimental import pallas as pl
from jax.experimental.pallas import tpu as pltpu

_LANES = 128
_TARGET_BLOCK_BYTES = 2 * 1024 * 1024   # ~2 MiB per block (f32 -> 4096 rows)
_MIN_BLOCK_BYTES = 256 * 1024           # never shrink blocks below ~256 KiB
_VMEM_LIMIT_BYTES = 32 * 1024 * 1024    # safe on v5e/v6e/v7x


def _round_up(a: int, b: int) -> int:
    return ((a + b - 1) // b) * b


def _make_clamp_kernel(min_val: float, max_val: float, dtype):
    if jnp.issubdtype(dtype, jnp.floating):
        def kernel(x_ref, o_ref):
            lo = jnp.asarray(min_val, dtype)
            hi = jnp.asarray(max_val, dtype)
            o_ref[...] = jnp.minimum(jnp.maximum(x_ref[...], lo), hi)
    else:
        # Integer inputs: compare against the (possibly fractional) float
        # bounds in f32 so e.g. min=-0.5 is not silently truncated to 0,
        # then cast the clamped result back to the integer dtype.
        # TODO(synk): torch.clamp's int->float output-type promotion for
        # float bounds on integer tensors is not fully replicated here.
        def kernel(x_ref, o_ref):
            x = x_ref[...].astype(jnp.float32)
            y = jnp.minimum(jnp.maximum(x, jnp.float32(min_val)),
                            jnp.float32(max_val))
            o_ref[...] = y.astype(o_ref.dtype)
    return kernel


def _pick_tile_rows(rows: int, itemsize: int) -> int:
    # Sublane packing: 8 rows per vreg tile for 32-bit, 16 for 16-bit, 32 for 8-bit.
    sub = 8 * max(1, 4 // max(1, itemsize))
    target = _round_up(max(sub, _TARGET_BLOCK_BYTES // (_LANES * itemsize)), sub)
    if rows <= target:
        return rows                        # single full-extent block (always legal)
    min_rows = _round_up(max(sub, _MIN_BLOCK_BYTES // (_LANES * itemsize)), sub)
    # Aim for >= 8 grid steps (DMA pipelining + megacore sharding on v7x).
    rows_for_8_steps = _round_up(pl.cdiv(rows, 8), sub)
    return max(min_rows, min(target, rows_for_8_steps))


def clamp_pallas(x: jax.Array, min_val: float, max_val: float,
                 donate_input: bool = False) -> jax.Array:
    """Elementwise clamp (torch.clamp semantics) via a Pallas TPU kernel."""
    orig_shape = x.shape
    dtype = x.dtype
    n = x.size
    if n == 0:
        return x

    itemsize = jnp.dtype(dtype).itemsize

    if n % _LANES == 0:
        # Free metadata reshape — no HBM copy.
        x2d = x.reshape(n // _LANES, _LANES)
        tail_pad = 0
    else:
        # Rare path: element count not 128-aligned; pad the flat array by the
        # sub-128 tail only.
        tail_pad = _LANES - (n % _LANES)
        x2d = jnp.pad(x.reshape(-1), (0, tail_pad)).reshape(-1, _LANES)

    rows = x2d.shape[0]
    tile_rows = _pick_tile_rows(rows, itemsize)
    grid = (pl.cdiv(rows, tile_rows),)

    out2d = pl.pallas_call(
        _make_clamp_kernel(min_val, max_val, dtype),
        out_shape=jax.ShapeDtypeStruct((rows, _LANES), dtype),
        grid_spec=pl.GridSpec(
            grid=grid,
            in_specs=[pl.BlockSpec((tile_rows, _LANES), lambda i: (i, 0))],
            out_specs=pl.BlockSpec((tile_rows, _LANES), lambda i: (i, 0)),
        ),
        # Only alias when the caller actually donates x; otherwise XLA inserts
        # a defensive full-size copy, which would defeat the purpose.
        input_output_aliases=({0: 0} if donate_input else {}),
        cost_estimate=pl.CostEstimate(
            flops=2 * n, transcendentals=0, bytes_accessed=2 * n * itemsize),
        compiler_params=pltpu.CompilerParams(
            dimension_semantics=("parallel",),
            vmem_limit_bytes=_VMEM_LIMIT_BYTES),
    )(x2d)

    if tail_pad:
        return out2d.reshape(-1)[:n].reshape(orig_shape)
    return out2d.reshape(orig_shape)


if __name__ == "__main__":
    MIN_VAL, MAX_VAL = -0.5, 0.5

    # Primary case: small NCHW-like float32 tensor (2048 elems, 128-aligned
    # -> copy-free fast path).
    x = jax.random.normal(jax.random.PRNGKey(0), (2, 4, 16, 16),
                          dtype=jnp.float32)
    out = clamp_pallas(x, MIN_VAL, MAX_VAL)
    jax.block_until_ready(out)
    ref = jnp.clip(x, MIN_VAL, MAX_VAL)
    assert out.shape == x.shape and out.dtype == x.dtype
    assert jnp.allclose(out, ref), "f32 mismatch vs reference clamp"

    # Non-128-aligned element count (exercises the tail-pad path).
    x_odd = jax.random.normal(jax.random.PRNGKey(1), (3, 5, 7), jnp.float32)
    out_odd = clamp_pallas(x_odd, MIN_VAL, MAX_VAL)
    jax.block_until_ready(out_odd)
    assert jnp.allclose(out_odd, jnp.clip(x_odd, MIN_VAL, MAX_VAL))

    # bf16 path (16-row sublane packing).
    x_bf16 = jax.random.normal(jax.random.PRNGKey(2), (4, 8, 32),
                               dtype=jnp.bfloat16)
    out_bf16 = clamp_pallas(x_bf16, MIN_VAL, MAX_VAL)
    jax.block_until_ready(out_bf16)
    assert out_bf16.dtype == jnp.bfloat16
    assert jnp.allclose(out_bf16.astype(jnp.float32),
                        jnp.clip(x_bf16, MIN_VAL, MAX_VAL).astype(jnp.float32))

    print("KERNEL_OK")
</pallas_src>

<mosaic_0001>
module attributes {stable_mosaic.version = 11 : i64} {
  func.func @kernel(%arg0: i32, %arg1: memref<16x128xf32, #tpu.memory_space<vmem>>, %arg2: memref<16x128xf32, #tpu.memory_space<vmem>>) attributes {dimension_semantics = [#tpu.dimension_semantics<parallel>], iteration_bounds = array<i64: 1>, scalar_prefetch = 0 : i64, scratch_operands = 0 : i64, tpu.core_type = #tpu.core_type<tc>, window_params = [{transform_indices = @transform_0, window_bounds = array<i64: 16, 128>}, {transform_indices = @transform_1, window_bounds = array<i64: 16, 128>}]} {
    %c0 = arith.constant 0 : index
    %c0_0 = arith.constant 0 : index
    %0 = vector.load %arg1[%c0, %c0_0] : memref<16x128xf32, #tpu.memory_space<vmem>>, vector<16x128xf32>
    %cst = arith.constant -5.000000e-01 : f32
    %1 = vector.broadcast %cst : f32 to vector<16x128xf32>
    %2 = arith.maximumf %0, %1 : vector<16x128xf32>
    %cst_1 = arith.constant 5.000000e-01 : f32
    %3 = vector.broadcast %cst_1 : f32 to vector<16x128xf32>
    %4 = arith.minimumf %2, %3 : vector<16x128xf32>
    %c0_2 = arith.constant 0 : index
    %c0_3 = arith.constant 0 : index
    %5 = vector.load %arg2[%c0_2, %c0_3] : memref<16x128xf32, #tpu.memory_space<vmem>>, vector<16x128xf32>
    tpu.vector_store %arg2[%c0_2, %c0_3], %4 {strides = array<i32>} : memref<16x128xf32, #tpu.memory_space<vmem>>, vector<16x128xf32>,
    return
  }
  func.func @transform_0(%arg0: i32) -> (i32, i32) {
    %c0_i32 = arith.constant 0 : i32
    %c0_i32_0 = arith.constant 0 : i32
    return %arg0, %c0_i32 : i32, i32
  }
  func.func @transform_1(%arg0: i32) -> (i32, i32) {
    %c0_i32 = arith.constant 0 : i32
    %c0_i32_0 = arith.constant 0 : i32
    return %arg0, %c0_i32 : i32, i32
  }
}

</mosaic_0001>

<bundles_post_ra>
// kernel: tpu_custom_call.1
= control target key start
LH: loop header
LB: loop body
LE: loop exit
PB: predicated region body
PF: predicated region fallthrough
CT: control target
= control target key end

     0   :  { %6 = vsyncpa [#allocation3], 0  ;;  %s118_s0 = inlined_call_operand.hbm [shape: f32[16,128], index: 0, kind: input, shape index: {}]   ;;  %s119_s1 = inlined_call_operand.hbm [shape: f32[16,128], index: 1, kind: output, shape index: {}]  }
   0x1   :  { %7 = vsyncpa [#allocation4], 0  ;;  %s98_s6 = smov [#allocation2]  }
   0x2   :  { %s13_s7 = sshll.u32 %s98_s6, 4  ;;  %s14_s7 = int_to_ptr.vmem [resolvable:$true] %s13_s7 }
   0x3   :  { %s62_s8 = scalar_lea.vmem %s14_s7, 256  ;;  %p67_p1 = scmp.lt.s32.totalorder %s14_s7, %s14_s7 }
   0x4   :  { %p63_p0 = scmp.ne.s32.totalorder %s14_s7, %s62_s8  ;;  %p68_p2 = scmp.lt.s32.totalorder %s62_s8, %s62_s8 }
   0x6   :  { %p69_p3 = por %p68_p2, %p67_p1 }
   0x8   :  { %p70_p4 = pnand %p69_p3, %p63_p0 }
   0xa   :  { %73 = shalt.err (!%p70_p4)
}
   0xb   :  { %s99_s9 = smov 128   ;;  %s100_s10 = smov 8  }
   0xc   :  { %19 = dma.hbm_to_vmem [thread:$0]  %s118_s0, 256, %s14_s7, [#allocation3], %s99_s9, %s99_s9, %s100_s10  }
   0xd   :  { %94 = dma.done.wait [#allocation3], 256  }
   0xe   :  { %95 = vsyncadd [#allocation3], 4294967040  ;;  %s101_s13 = smov [#allocation5]   ;;  %v23_v0 = vld [vmem:[#allocation2] sm:$0xff]  ;;  %v24_v1 = vld [vmem:[#allocation2 + $0x8] sm:$0xff] }
   0xf   :  { %s36_s14 = sshll.u32 %s101_s13, 4  ;;  %v48_v2 = vclamps-f32 %v23_v0, 0.5  ;;  %v49_v3 = vclamps-f32 %v24_v1, 0.5  ;;  %s37_s14 = int_to_ptr.vmem [resolvable:$true] %s36_s14 }
  0x10   :  { %s74_s15 = scalar_lea.vmem %s37_s14, 256  ;;  %p79_p6 = scmp.lt.s32.totalorder %s37_s14, %s37_s14 }
  0x11   :  { %29 = vst [vmem:[#allocation5] sm:$0xff] %v48_v2  ;;  %30 = vst [vmem:[#allocation5 + $0x8] sm:$0xff] %v49_v3  ;;  %p75_p5 = scmp.ne.s32.totalorder %s37_s14, %s74_s15  ;;  %p80_p7 = scmp.lt.s32.totalorder %s74_s15, %s74_s15 }
  0x13   :  { %p81_p8 = por %p80_p7, %p79_p6 }
  0x15   :  { %p82_p9 = pnand %p81_p8, %p75_p5 }
  0x17   :  { %85 = shalt.err (!%p82_p9)
}
  0x18   :  { %42 = dma.vmem_to_hbm [thread:$0]  %s37_s14, 256, %s119_s1, [#allocation4], %s99_s9, %s99_s9, %s100_s10  }
  0x19   :  { %96 = dma.done.wait [#allocation4], 256  }
  0x1a   :  { %97 = vsyncadd [#allocation4], 4294967040 }
  0x1b   :  { %46 = vsyncpa [#allocation3], 1 }
  0x1c   :  { %47 = vsyncpa [#allocation4], 1 }

</bundles_post_ra>
